<compile_context>
chip_gen: v7x
topology: tpu7x:2x2x1
jax: 0.10.0
libtpu: 0.0.40
codegen_flags: <defaults>
</compile_context>

<pallas_src>
import functools
import math

import jax
import jax.numpy as jnp
from jax.experimental import pallas as pl
from jax.experimental.pallas import tpu as pltpu


# ----------------------------------------------------------------------------
# Kernel
# ----------------------------------------------------------------------------
def _layernorm(x, gamma, beta, eps=1e-5):
    mean = jnp.mean(x, axis=-1, keepdims=True)
    var = jnp.mean((x - mean) ** 2, axis=-1, keepdims=True)
    return (x - mean) * jax.lax.rsqrt(var + eps) * gamma + beta


def decoder_layer_kernel(x_ref, ln1g_ref, ln1b_ref, wqkv_ref, wo_ref, bo_ref,
                         ln2g_ref, ln2b_ref, w1_ref, b1_ref, w2_ref, b2_ref,
                         o_ref, act_ref, *, heads, dim_head, scale, compute_dtype):
    layer = pl.program_id(1)

    # First layer for this batch block: load the input into the resident f32 stream.
    @pl.when(layer == 0)
    def _():
        act_ref[...] = x_ref[0].astype(jnp.float32)

    x = act_ref[...]                                    # (N, D) f32 residual stream
    inner = heads * dim_head

    def mm(a, b):                                       # a @ b, f32 accumulation
        return jnp.dot(a.astype(compute_dtype), b.astype(compute_dtype),
                       preferred_element_type=jnp.float32)

    def mm_nt(a, b):                                    # a @ b.T without a transpose op
        return jax.lax.dot_general(
            a.astype(compute_dtype), b.astype(compute_dtype),
            dimension_numbers=(((1,), (1,)), ((), ())),
            preferred_element_type=jnp.float32)

    # ---------------- PreNorm multi-head attention ----------------
    xn = _layernorm(x, ln1g_ref[0], ln1b_ref[0])
    qkv = mm(xn, wqkv_ref[0])                           # (N, 3*inner)
    wo = wo_ref[0]                                      # (inner, D), pre-transposed

    attn_out = jnp.zeros_like(x)                        # (N, D)
    for h in range(heads):                              # heads is small & static -> unrolled
        lo = h * dim_head
        hi = (h + 1) * dim_head
        q = qkv[:, lo:hi]                               # (N, dh)
        k = qkv[:, inner + lo:inner + hi]               # (N, dh)
        v = qkv[:, 2 * inner + lo:2 * inner + hi]       # (N, dh)

        dots = mm_nt(q, k) * scale                      # (N, N)
        dots = dots - jnp.max(dots, axis=-1, keepdims=True)
        p = jnp.exp(dots)
        probs = p * pl.reciprocal(jnp.sum(p, axis=-1, keepdims=True), approx=True)
        head_out = mm(probs, v)                         # (N, dh)
        # accumulate this head's contribution straight into the output projection
        attn_out = attn_out + mm(head_out, wo[lo:hi, :])

    x = x + attn_out + bo_ref[0]                        # residual (f32)

    # ---------------- PreNorm feed-forward ----------------
    xn = _layernorm(x, ln2g_ref[0], ln2b_ref[0])
    hdn = mm(xn, w1_ref[0]) + b1_ref[0]
    # exact (erf-based) GELU, matching torch.nn.GELU default
    hdn = 0.5 * hdn * (1.0 + jax.lax.erf(hdn * (1.0 / math.sqrt(2.0))))
    x = x + mm(hdn, w2_ref[0]) + b2_ref[0]              # residual (f32)

    act_ref[...] = x                                    # stays resident for next layer

    @pl.when(layer == pl.num_programs(1) - 1)
    def _():
        o_ref[0] = x.astype(o_ref.dtype)


# ----------------------------------------------------------------------------
# Wrapper
# ----------------------------------------------------------------------------
def transformer_decoder(x, params, heads, dim_head, compute_dtype=jnp.float32):
    B, N, D = x.shape
    depth = params["w_qkv"].shape[0]
    inner = heads * dim_head
    mlp_dim = params["w1"].shape[-1]
    scale = dim_head ** (-0.5)

    kern = functools.partial(decoder_layer_kernel, heads=heads, dim_head=dim_head,
                             scale=scale, compute_dtype=compute_dtype)

    def layer_spec(trailing):
        # one layer slice of a depth-stacked parameter; trailing dims are the full array dims
        return pl.BlockSpec((1,) + trailing, lambda b, d: (d, 0, 0))

    in_specs = [
        pl.BlockSpec((1, N, D), lambda b, d: (b, 0, 0)),    # x (fetched once per batch block)
        layer_spec((1, D)),            # ln1_g
        layer_spec((1, D)),            # ln1_b
        layer_spec((D, 3 * inner)),    # w_qkv  (pre-transposed: in x out)
        layer_spec((inner, D)),        # w_o
        layer_spec((1, D)),            # b_o
        layer_spec((1, D)),            # ln2_g
        layer_spec((1, D)),            # ln2_b
        layer_spec((D, mlp_dim)),      # w1
        layer_spec((1, mlp_dim)),      # b1
        layer_spec((mlp_dim, D)),      # w2
        layer_spec((1, D)),            # b2
    ]

    return pl.pallas_call(
        kern,
        out_shape=jax.ShapeDtypeStruct((B, N, D), x.dtype),
        grid=(B, depth),
        in_specs=in_specs,
        out_specs=pl.BlockSpec((1, N, D), lambda b, d: (b, 0, 0)),
        scratch_shapes=[pltpu.VMEM((N, D), jnp.float32)],   # resident residual stream
        compiler_params=pltpu.CompilerParams(
            dimension_semantics=("parallel", "arbitrary")),
    )(x, params["ln1_g"], params["ln1_b"], params["w_qkv"], params["w_o"],
      params["b_o"], params["ln2_g"], params["ln2_b"], params["w1"],
      params["b1"], params["w2"], params["b2"])


# ----------------------------------------------------------------------------
# Deterministic parameter construction (pre-transposed, depth-stacked layouts)
# ----------------------------------------------------------------------------
def init_params(key, depth, dim, heads, dim_head, mlp_dim):
    inner = heads * dim_head
    ks = jax.random.split(key, 6)

    def rnd(k, shape):
        return (0.02 * jax.random.normal(k, shape)).astype(jnp.float32)

    return {
        "ln1_g": jnp.ones((depth, 1, dim), jnp.float32),
        "ln1_b": jnp.zeros((depth, 1, dim), jnp.float32),
        "w_qkv": rnd(ks[0], (depth, dim, 3 * inner)),
        "w_o":   rnd(ks[1], (depth, inner, dim)),
        "b_o":   rnd(ks[2], (depth, 1, dim)),
        "ln2_g": jnp.ones((depth, 1, dim), jnp.float32),
        "ln2_b": jnp.zeros((depth, 1, dim), jnp.float32),
        "w1":    rnd(ks[3], (depth, dim, mlp_dim)),
        "b1":    rnd(ks[4], (depth, 1, mlp_dim)),
        "w2":    rnd(ks[5], (depth, mlp_dim, dim)),
        "b2":    jnp.zeros((depth, 1, dim), jnp.float32),
    }


# ----------------------------------------------------------------------------
# Pure-JAX reference (for correctness check)
# ----------------------------------------------------------------------------
def reference_decoder(x, params, heads, dim_head):
    def ln(v, g, b):
        m = jnp.mean(v, -1, keepdims=True)
        var = jnp.mean((v - m) ** 2, -1, keepdims=True)
        return (v - m) / jnp.sqrt(var + 1e-5) * g + b

    B, N, D = x.shape
    depth = params["w_qkv"].shape[0]
    inner = heads * dim_head
    scale = dim_head ** (-0.5)

    for d in range(depth):
        xn = ln(x, params["ln1_g"][d, 0], params["ln1_b"][d, 0])
        qkv = xn @ params["w_qkv"][d]
        q, k, v = jnp.split(qkv, 3, axis=-1)
        q = q.reshape(B, N, heads, dim_head).transpose(0, 2, 1, 3)
        k = k.reshape(B, N, heads, dim_head).transpose(0, 2, 1, 3)
        v = v.reshape(B, N, heads, dim_head).transpose(0, 2, 1, 3)
        dots = jnp.einsum("bhnd,bhmd->bhnm", q, k) * scale
        attn = jax.nn.softmax(dots, axis=-1)
        out = jnp.einsum("bhnm,bhmd->bhnd", attn, v)
        out = out.transpose(0, 2, 1, 3).reshape(B, N, inner)
        x = out @ params["w_o"][d] + params["b_o"][d, 0] + x

        xn = ln(x, params["ln2_g"][d, 0], params["ln2_b"][d, 0])
        h = xn @ params["w1"][d] + params["b1"][d, 0]
        h = 0.5 * h * (1.0 + jax.lax.erf(h / jnp.sqrt(2.0)))
        x = h @ params["w2"][d] + params["b2"][d, 0] + x
    return x


# ----------------------------------------------------------------------------
if __name__ == "__main__":
    # small shapes consistent with the module: batch=2, seq=8, dim=32
    B, N, dim = 2, 8, 32
    depth, heads, dim_head, mlp_dim = 2, 4, 8, 64

    key = jax.random.PRNGKey(0)
    kx, kp = jax.random.split(key)
    x = jax.random.normal(kx, (B, N, dim), dtype=jnp.float32)
    params = init_params(kp, depth, dim, heads, dim_head, mlp_dim)

    out = transformer_decoder(x, params, heads, dim_head)
    out = jax.block_until_ready(out)

    ref = reference_decoder(x, params, heads, dim_head)
    assert out.shape == (B, N, dim)
    # tolerance slightly loosened vs exact math because of approx=True softmax reciprocal
    assert jnp.allclose(out, ref, atol=2e-3, rtol=2e-3), "mismatch vs pure-JAX reference"

    print("KERNEL_OK")
</pallas_src>

<mosaic_0001>
module attributes {stable_mosaic.version = 11 : i64} {
  func.func @decoder_layer_kernel(%arg0: i32, %arg1: i32, %arg2: memref<1x8x32xf32, #tpu.memory_space<vmem>>, %arg3: memref<1x1x32xf32, #tpu.memory_space<vmem>>, %arg4: memref<1x1x32xf32, #tpu.memory_space<vmem>>, %arg5: memref<1x32x96xf32, #tpu.memory_space<vmem>>, %arg6: memref<1x32x32xf32, #tpu.memory_space<vmem>>, %arg7: memref<1x1x32xf32, #tpu.memory_space<vmem>>, %arg8: memref<1x1x32xf32, #tpu.memory_space<vmem>>, %arg9: memref<1x1x32xf32, #tpu.memory_space<vmem>>, %arg10: memref<1x32x64xf32, #tpu.memory_space<vmem>>, %arg11: memref<1x1x64xf32, #tpu.memory_space<vmem>>, %arg12: memref<1x64x32xf32, #tpu.memory_space<vmem>>, %arg13: memref<1x1x32xf32, #tpu.memory_space<vmem>>, %arg14: memref<1x8x32xf32, #tpu.memory_space<vmem>>, %arg15: memref<8x32xf32, #tpu.memory_space<vmem>>) attributes {dimension_semantics = [#tpu.dimension_semantics<parallel>, #tpu.dimension_semantics<arbitrary>], iteration_bounds = array<i64: 2, 2>, scalar_prefetch = 0 : i64, scratch_operands = 1 : i64, tpu.core_type = #tpu.core_type<tc>, window_params = [{transform_indices = @transform_0, window_bounds = array<i64: 1, 8, 32>}, {transform_indices = @transform_1, window_bounds = array<i64: 1, 1, 32>}, {transform_indices = @transform_2, window_bounds = array<i64: 1, 1, 32>}, {transform_indices = @transform_3, window_bounds = array<i64: 1, 32, 96>}, {transform_indices = @transform_4, window_bounds = array<i64: 1, 32, 32>}, {transform_indices = @transform_5, window_bounds = array<i64: 1, 1, 32>}, {transform_indices = @transform_6, window_bounds = array<i64: 1, 1, 32>}, {transform_indices = @transform_7, window_bounds = array<i64: 1, 1, 32>}, {transform_indices = @transform_8, window_bounds = array<i64: 1, 32, 64>}, {transform_indices = @transform_9, window_bounds = array<i64: 1, 1, 64>}, {transform_indices = @transform_10, window_bounds = array<i64: 1, 64, 32>}, {transform_indices = @transform_11, window_bounds = array<i64: 1, 1, 32>}, {transform_indices = @transform_12, window_bounds = array<i64: 1, 8, 32>}]} {
    %c0_i32 = arith.constant 0 : i32
    %0 = arith.cmpi eq, %arg1, %c0_i32 : i32
    %1 = arith.extui %0 : i1 to i32
    %c0_i32_0 = arith.constant 0 : i32
    %2 = arith.cmpi ne, %1, %c0_i32_0 : i32
    scf.if %2 {
      %c0_78 = arith.constant 0 : index
      %c0_79 = arith.constant 0 : index
      %c0_80 = arith.constant 0 : index
      %174 = vector.load %arg2[%c0_78, %c0_79, %c0_80] : memref<1x8x32xf32, #tpu.memory_space<vmem>>, vector<1x8x32xf32>
      %175 = vector.shape_cast %174 : vector<1x8x32xf32> to vector<8x32xf32>
      %c0_81 = arith.constant 0 : index
      %c0_82 = arith.constant 0 : index
      %176 = vector.load %arg15[%c0_81, %c0_82] : memref<8x32xf32, #tpu.memory_space<vmem>>, vector<8x32xf32>
      tpu.vector_store %arg15[%c0_81, %c0_82], %175 {strides = array<i32>} : memref<8x32xf32, #tpu.memory_space<vmem>>, vector<8x32xf32>,
    } else {
    }
    %c0 = arith.constant 0 : index
    %c0_1 = arith.constant 0 : index
    %3 = vector.load %arg15[%c0, %c0_1] : memref<8x32xf32, #tpu.memory_space<vmem>>, vector<8x32xf32>
    %c0_2 = arith.constant 0 : index
    %c0_3 = arith.constant 0 : index
    %c0_4 = arith.constant 0 : index
    %4 = vector.load %arg3[%c0_2, %c0_3, %c0_4] : memref<1x1x32xf32, #tpu.memory_space<vmem>>, vector<1x1x32xf32>
    %5 = vector.shape_cast %4 : vector<1x1x32xf32> to vector<1x32xf32>
    %c0_5 = arith.constant 0 : index
    %c0_6 = arith.constant 0 : index
    %c0_7 = arith.constant 0 : index
    %6 = vector.load %arg4[%c0_5, %c0_6, %c0_7] : memref<1x1x32xf32, #tpu.memory_space<vmem>>, vector<1x1x32xf32>
    %7 = vector.shape_cast %6 : vector<1x1x32xf32> to vector<1x32xf32>
    %cst = arith.constant dense<0.000000e+00> : vector<8xf32>
    %8 = vector.multi_reduction <add>, %3, %cst [1] : vector<8x32xf32> to vector<8xf32>
    %9 = vector.shape_cast %8 : vector<8xf32> to vector<8x1xf32>
    %cst_8 = arith.constant 3.200000e+01 : f32
    %10 = vector.broadcast %cst_8 : f32 to vector<8x1xf32>
    %11 = arith.divf %9, %10 : vector<8x1xf32>
    %12 = vector.broadcast %11 : vector<8x1xf32> to vector<8x32xf32>
    %13 = arith.subf %3, %12 : vector<8x32xf32>
    %14 = arith.mulf %13, %13 : vector<8x32xf32>
    %cst_9 = arith.constant dense<0.000000e+00> : vector<8xf32>
    %15 = vector.multi_reduction <add>, %14, %cst_9 [1] : vector<8x32xf32> to vector<8xf32>
    %16 = vector.shape_cast %15 : vector<8xf32> to vector<8x1xf32>
    %cst_10 = arith.constant 3.200000e+01 : f32
    %17 = vector.broadcast %cst_10 : f32 to vector<8x1xf32>
    %18 = arith.divf %16, %17 : vector<8x1xf32>
    %19 = vector.broadcast %11 : vector<8x1xf32> to vector<8x32xf32>
    %20 = arith.subf %3, %19 : vector<8x32xf32>
    %cst_11 = arith.constant 9.99999974E-6 : f32
    %21 = vector.broadcast %cst_11 : f32 to vector<8x1xf32>
    %22 = arith.addf %18, %21 : vector<8x1xf32>
    %23 = math.rsqrt %22 : vector<8x1xf32>
    %24 = vector.broadcast %23 : vector<8x1xf32> to vector<8x32xf32>
    %25 = arith.mulf %20, %24 : vector<8x32xf32>
    %26 = vector.broadcast %5 : vector<1x32xf32> to vector<8x32xf32>
    %27 = arith.mulf %25, %26 : vector<8x32xf32>
    %28 = vector.broadcast %7 : vector<1x32xf32> to vector<8x32xf32>
    %29 = arith.addf %27, %28 : vector<8x32xf32>
    %c0_12 = arith.constant 0 : index
    %c0_13 = arith.constant 0 : index
    %c0_14 = arith.constant 0 : index
    %30 = vector.load %arg5[%c0_12, %c0_13, %c0_14] : memref<1x32x96xf32, #tpu.memory_space<vmem>>, vector<1x32x96xf32>
    %31 = vector.shape_cast %30 : vector<1x32x96xf32> to vector<32x96xf32>
    %cst_15 = arith.constant dense<0.000000e+00> : vector<8x96xf32>
    %32 = tpu.matmul %29, %31, %cst_15 {dimension_numbers = #tpu.dot_dimension_numbers<[1], [0], [0], [1], [0, 0, 1, 1], [], []>} : vector<8x32xf32>, vector<32x96xf32>, vector<8x96xf32> -> vector<8x96xf32>
    %c0_16 = arith.constant 0 : index
    %c0_17 = arith.constant 0 : index
    %c0_18 = arith.constant 0 : index
    %33 = vector.load %arg6[%c0_16, %c0_17, %c0_18] : memref<1x32x32xf32, #tpu.memory_space<vmem>>, vector<1x32x32xf32>
    %34 = vector.shape_cast %33 : vector<1x32x32xf32> to vector<32x32xf32>
    %cst_19 = arith.constant 0.000000e+00 : f32
    %35 = vector.broadcast %cst_19 : f32 to vector<8x32xf32>
    %36 = vector.extract_strided_slice %32 {offsets = [0, 0], sizes = [8, 8], strides = [1, 1]} : vector<8x96xf32> to vector<8x8xf32>
    %37 = vector.extract_strided_slice %32 {offsets = [0, 32], sizes = [8, 8], strides = [1, 1]} : vector<8x96xf32> to vector<8x8xf32>
    %38 = vector.extract_strided_slice %32 {offsets = [0, 64], sizes = [8, 8], strides = [1, 1]} : vector<8x96xf32> to vector<8x8xf32>
    %cst_20 = arith.constant dense<0.000000e+00> : vector<8x8xf32>
    %39 = tpu.matmul %36, %37, %cst_20 {dimension_numbers = #tpu.dot_dimension_numbers<[1], [1], [0], [0], [0, 0, 1, 0], [], []>} : vector<8x8xf32>, vector<8x8xf32>, vector<8x8xf32> -> vector<8x8xf32>
    %cst_21 = arith.constant 0.353553385 : f32
    %40 = vector.broadcast %cst_21 : f32 to vector<8x8xf32>
    %41 = arith.mulf %39, %40 : vector<8x8xf32>
    %cst_22 = arith.constant dense<0xFF800000> : vector<8xf32>
    %42 = vector.multi_reduction <maximumf>, %41, %cst_22 [1] : vector<8x8xf32> to vector<8xf32>
    %43 = vector.shape_cast %42 : vector<8xf32> to vector<8x1xf32>
    %44 = vector.broadcast %43 : vector<8x1xf32> to vector<8x8xf32>
    %45 = arith.subf %41, %44 : vector<8x8xf32>
    %46 = math.exp %45 : vector<8x8xf32>
    %cst_23 = arith.constant dense<0.000000e+00> : vector<8xf32>
    %47 = vector.multi_reduction <add>, %46, %cst_23 [1] : vector<8x8xf32> to vector<8xf32>
    %48 = vector.shape_cast %47 : vector<8xf32> to vector<8x1xf32>
    %49 = tpu.reciprocal %48 {approx = true} : vector<8x1xf32> -> vector<8x1xf32>
    %50 = vector.broadcast %49 : vector<8x1xf32> to vector<8x8xf32>
    %51 = arith.mulf %46, %50 : vector<8x8xf32>
    %cst_24 = arith.constant dense<0.000000e+00> : vector<8x8xf32>
    %52 = tpu.matmul %51, %38, %cst_24 {dimension_numbers = #tpu.dot_dimension_numbers<[1], [0], [0], [1], [0, 0, 1, 1], [], []>} : vector<8x8xf32>, vector<8x8xf32>, vector<8x8xf32> -> vector<8x8xf32>
    %53 = vector.extract_strided_slice %34 {offsets = [0, 0], sizes = [8, 32], strides = [1, 1]} : vector<32x32xf32> to vector<8x32xf32>
    %cst_25 = arith.constant dense<0.000000e+00> : vector<8x32xf32>
    %54 = tpu.matmul %52, %53, %cst_25 {dimension_numbers = #tpu.dot_dimension_numbers<[1], [0], [0], [1], [0, 0, 1, 1], [], []>} : vector<8x8xf32>, vector<8x32xf32>, vector<8x32xf32> -> vector<8x32xf32>
    %55 = arith.addf %35, %54 : vector<8x32xf32>
    %56 = vector.extract_strided_slice %32 {offsets = [0, 8], sizes = [8, 8], strides = [1, 1]} : vector<8x96xf32> to vector<8x8xf32>
    %57 = vector.extract_strided_slice %32 {offsets = [0, 40], sizes = [8, 8], strides = [1, 1]} : vector<8x96xf32> to vector<8x8xf32>
    %58 = vector.extract_strided_slice %32 {offsets = [0, 72], sizes = [8, 8], strides = [1, 1]} : vector<8x96xf32> to vector<8x8xf32>
    %cst_26 = arith.constant dense<0.000000e+00> : vector<8x8xf32>
    %59 = tpu.matmul %56, %57, %cst_26 {dimension_numbers = #tpu.dot_dimension_numbers<[1], [1], [0], [0], [0, 0, 1, 0], [], []>} : vector<8x8xf32>, vector<8x8xf32>, vector<8x8xf32> -> vector<8x8xf32>
    %cst_27 = arith.constant 0.353553385 : f32
    %60 = vector.broadcast %cst_27 : f32 to vector<8x8xf32>
    %61 = arith.mulf %59, %60 : vector<8x8xf32>
    %cst_28 = arith.constant dense<0xFF800000> : vector<8xf32>
    %62 = vector.multi_reduction <maximumf>, %61, %cst_28 [1] : vector<8x8xf32> to vector<8xf32>
    %63 = vector.shape_cast %62 : vector<8xf32> to vector<8x1xf32>
    %64 = vector.broadcast %63 : vector<8x1xf32> to vector<8x8xf32>
    %65 = arith.subf %61, %64 : vector<8x8xf32>
    %66 = math.exp %65 : vector<8x8xf32>
    %cst_29 = arith.constant dense<0.000000e+00> : vector<8xf32>
    %67 = vector.multi_reduction <add>, %66, %cst_29 [1] : vector<8x8xf32> to vector<8xf32>
    %68 = vector.shape_cast %67 : vector<8xf32> to vector<8x1xf32>
    %69 = tpu.reciprocal %68 {approx = true} : vector<8x1xf32> -> vector<8x1xf32>
    %70 = vector.broadcast %69 : vector<8x1xf32> to vector<8x8xf32>
    %71 = arith.mulf %66, %70 : vector<8x8xf32>
    %cst_30 = arith.constant dense<0.000000e+00> : vector<8x8xf32>
    %72 = tpu.matmul %71, %58, %cst_30 {dimension_numbers = #tpu.dot_dimension_numbers<[1], [0], [0], [1], [0, 0, 1, 1], [], []>} : vector<8x8xf32>, vector<8x8xf32>, vector<8x8xf32> -> vector<8x8xf32>
    %73 = vector.extract_strided_slice %34 {offsets = [8, 0], sizes = [8, 32], strides = [1, 1]} : vector<32x32xf32> to vector<8x32xf32>
    %cst_31 = arith.constant dense<0.000000e+00> : vector<8x32xf32>
    %74 = tpu.matmul %72, %73, %cst_31 {dimension_numbers = #tpu.dot_dimension_numbers<[1], [0], [0], [1], [0, 0, 1, 1], [], []>} : vector<8x8xf32>, vector<8x32xf32>, vector<8x32xf32> -> vector<8x32xf32>
    %75 = arith.addf %55, %74 : vector<8x32xf32>
    %76 = vector.extract_strided_slice %32 {offsets = [0, 16], sizes = [8, 8], strides = [1, 1]} : vector<8x96xf32> to vector<8x8xf32>
    %77 = vector.extract_strided_slice %32 {offsets = [0, 48], sizes = [8, 8], strides = [1, 1]} : vector<8x96xf32> to vector<8x8xf32>
    %78 = vector.extract_strided_slice %32 {offsets = [0, 80], sizes = [8, 8], strides = [1, 1]} : vector<8x96xf32> to vector<8x8xf32>
    %cst_32 = arith.constant dense<0.000000e+00> : vector<8x8xf32>
    %79 = tpu.matmul %76, %77, %cst_32 {dimension_numbers = #tpu.dot_dimension_numbers<[1], [1], [0], [0], [0, 0, 1, 0], [], []>} : vector<8x8xf32>, vector<8x8xf32>, vector<8x8xf32> -> vector<8x8xf32>
    %cst_33 = arith.constant 0.353553385 : f32
    %80 = vector.broadcast %cst_33 : f32 to vector<8x8xf32>
    %81 = arith.mulf %79, %80 : vector<8x8xf32>
    %cst_34 = arith.constant dense<0xFF800000> : vector<8xf32>
    %82 = vector.multi_reduction <maximumf>, %81, %cst_34 [1] : vector<8x8xf32> to vector<8xf32>
    %83 = vector.shape_cast %82 : vector<8xf32> to vector<8x1xf32>
    %84 = vector.broadcast %83 : vector<8x1xf32> to vector<8x8xf32>
    %85 = arith.subf %81, %84 : vector<8x8xf32>
    %86 = math.exp %85 : vector<8x8xf32>
    %cst_35 = arith.constant dense<0.000000e+00> : vector<8xf32>
    %87 = vector.multi_reduction <add>, %86, %cst_35 [1] : vector<8x8xf32> to vector<8xf32>
    %88 = vector.shape_cast %87 : vector<8xf32> to vector<8x1xf32>
    %89 = tpu.reciprocal %88 {approx = true} : vector<8x1xf32> -> vector<8x1xf32>
    %90 = vector.broadcast %89 : vector<8x1xf32> to vector<8x8xf32>
    %91 = arith.mulf %86, %90 : vector<8x8xf32>
    %cst_36 = arith.constant dense<0.000000e+00> : vector<8x8xf32>
    %92 = tpu.matmul %91, %78, %cst_36 {dimension_numbers = #tpu.dot_dimension_numbers<[1], [0], [0], [1], [0, 0, 1, 1], [], []>} : vector<8x8xf32>, vector<8x8xf32>, vector<8x8xf32> -> vector<8x8xf32>
    %93 = vector.extract_strided_slice %34 {offsets = [16, 0], sizes = [8, 32], strides = [1, 1]} : vector<32x32xf32> to vector<8x32xf32>
    %cst_37 = arith.constant dense<0.000000e+00> : vector<8x32xf32>
    %94 = tpu.matmul %92, %93, %cst_37 {dimension_numbers = #tpu.dot_dimension_numbers<[1], [0], [0], [1], [0, 0, 1, 1], [], []>} : vector<8x8xf32>, vector<8x32xf32>, vector<8x32xf32> -> vector<8x32xf32>
    %95 = arith.addf %75, %94 : vector<8x32xf32>
    %96 = vector.extract_strided_slice %32 {offsets = [0, 24], sizes = [8, 8], strides = [1, 1]} : vector<8x96xf32> to vector<8x8xf32>
    %97 = vector.extract_strided_slice %32 {offsets = [0, 56], sizes = [8, 8], strides = [1, 1]} : vector<8x96xf32> to vector<8x8xf32>
    %98 = vector.extract_strided_slice %32 {offsets = [0, 88], sizes = [8, 8], strides = [1, 1]} : vector<8x96xf32> to vector<8x8xf32>
    %cst_38 = arith.constant dense<0.000000e+00> : vector<8x8xf32>
    %99 = tpu.matmul %96, %97, %cst_38 {dimension_numbers = #tpu.dot_dimension_numbers<[1], [1], [0], [0], [0, 0, 1, 0], [], []>} : vector<8x8xf32>, vector<8x8xf32>, vector<8x8xf32> -> vector<8x8xf32>
    %cst_39 = arith.constant 0.353553385 : f32
    %100 = vector.broadcast %cst_39 : f32 to vector<8x8xf32>
    %101 = arith.mulf %99, %100 : vector<8x8xf32>
    %cst_40 = arith.constant dense<0xFF800000> : vector<8xf32>
    %102 = vector.multi_reduction <maximumf>, %101, %cst_40 [1] : vector<8x8xf32> to vector<8xf32>
    %103 = vector.shape_cast %102 : vector<8xf32> to vector<8x1xf32>
    %104 = vector.broadcast %103 : vector<8x1xf32> to vector<8x8xf32>
    %105 = arith.subf %101, %104 : vector<8x8xf32>
    %106 = math.exp %105 : vector<8x8xf32>
    %cst_41 = arith.constant dense<0.000000e+00> : vector<8xf32>
    %107 = vector.multi_reduction <add>, %106, %cst_41 [1] : vector<8x8xf32> to vector<8xf32>
    %108 = vector.shape_cast %107 : vector<8xf32> to vector<8x1xf32>
    %109 = tpu.reciprocal %108 {approx = true} : vector<8x1xf32> -> vector<8x1xf32>
    %110 = vector.broadcast %109 : vector<8x1xf32> to vector<8x8xf32>
    %111 = arith.mulf %106, %110 : vector<8x8xf32>
    %cst_42 = arith.constant dense<0.000000e+00> : vector<8x8xf32>
    %112 = tpu.matmul %111, %98, %cst_42 {dimension_numbers = #tpu.dot_dimension_numbers<[1], [0], [0], [1], [0, 0, 1, 1], [], []>} : vector<8x8xf32>, vector<8x8xf32>, vector<8x8xf32> -> vector<8x8xf32>
    %113 = vector.extract_strided_slice %34 {offsets = [24, 0], sizes = [8, 32], strides = [1, 1]} : vector<32x32xf32> to vector<8x32xf32>
    %cst_43 = arith.constant dense<0.000000e+00> : vector<8x32xf32>
    %114 = tpu.matmul %112, %113, %cst_43 {dimension_numbers = #tpu.dot_dimension_numbers<[1], [0], [0], [1], [0, 0, 1, 1], [], []>} : vector<8x8xf32>, vector<8x32xf32>, vector<8x32xf32> -> vector<8x32xf32>
    %115 = arith.addf %95, %114 : vector<8x32xf32>
    %116 = arith.addf %3, %115 : vector<8x32xf32>
    %c0_44 = arith.constant 0 : index
    %c0_45 = arith.constant 0 : index
    %c0_46 = arith.constant 0 : index
    %117 = vector.load %arg7[%c0_44, %c0_45, %c0_46] : memref<1x1x32xf32, #tpu.memory_space<vmem>>, vector<1x1x32xf32>
    %118 = vector.shape_cast %117 : vector<1x1x32xf32> to vector<1x32xf32>
    %119 = vector.broadcast %118 : vector<1x32xf32> to vector<8x32xf32>
    %120 = arith.addf %116, %119 : vector<8x32xf32>
    %c0_47 = arith.constant 0 : index
    %c0_48 = arith.constant 0 : index
    %c0_49 = arith.constant 0 : index
    %121 = vector.load %arg8[%c0_47, %c0_48, %c0_49] : memref<1x1x32xf32, #tpu.memory_space<vmem>>, vector<1x1x32xf32>
    %122 = vector.shape_cast %121 : vector<1x1x32xf32> to vector<1x32xf32>
    %c0_50 = arith.constant 0 : index
    %c0_51 = arith.constant 0 : index
    %c0_52 = arith.constant 0 : index
    %123 = vector.load %arg9[%c0_50, %c0_51, %c0_52] : memref<1x1x32xf32, #tpu.memory_space<vmem>>, vector<1x1x32xf32>
    %124 = vector.shape_cast %123 : vector<1x1x32xf32> to vector<1x32xf32>
    %cst_53 = arith.constant dense<0.000000e+00> : vector<8xf32>
    %125 = vector.multi_reduction <add>, %120, %cst_53 [1] : vector<8x32xf32> to vector<8xf32>
    %126 = vector.shape_cast %125 : vector<8xf32> to vector<8x1xf32>
    %cst_54 = arith.constant 3.200000e+01 : f32
    %127 = vector.broadcast %cst_54 : f32 to vector<8x1xf32>
    %128 = arith.divf %126, %127 : vector<8x1xf32>
    %129 = vector.broadcast %128 : vector<8x1xf32> to vector<8x32xf32>
    %130 = arith.subf %120, %129 : vector<8x32xf32>
    %131 = arith.mulf %130, %130 : vector<8x32xf32>
    %cst_55 = arith.constant dense<0.000000e+00> : vector<8xf32>
    %132 = vector.multi_reduction <add>, %131, %cst_55 [1] : vector<8x32xf32> to vector<8xf32>
    %133 = vector.shape_cast %132 : vector<8xf32> to vector<8x1xf32>
    %cst_56 = arith.constant 3.200000e+01 : f32
    %134 = vector.broadcast %cst_56 : f32 to vector<8x1xf32>
    %135 = arith.divf %133, %134 : vector<8x1xf32>
    %136 = vector.broadcast %128 : vector<8x1xf32> to vector<8x32xf32>
    %137 = arith.subf %120, %136 : vector<8x32xf32>
    %cst_57 = arith.constant 9.99999974E-6 : f32
    %138 = vector.broadcast %cst_57 : f32 to vector<8x1xf32>
    %139 = arith.addf %135, %138 : vector<8x1xf32>
    %140 = math.rsqrt %139 : vector<8x1xf32>
    %141 = vector.broadcast %140 : vector<8x1xf32> to vector<8x32xf32>
    %142 = arith.mulf %137, %141 : vector<8x32xf32>
    %143 = vector.broadcast %122 : vector<1x32xf32> to vector<8x32xf32>
    %144 = arith.mulf %142, %143 : vector<8x32xf32>
    %145 = vector.broadcast %124 : vector<1x32xf32> to vector<8x32xf32>
    %146 = arith.addf %144, %145 : vector<8x32xf32>
    %c0_58 = arith.constant 0 : index
    %c0_59 = arith.constant 0 : index
    %c0_60 = arith.constant 0 : index
    %147 = vector.load %arg10[%c0_58, %c0_59, %c0_60] : memref<1x32x64xf32, #tpu.memory_space<vmem>>, vector<1x32x64xf32>
    %148 = vector.shape_cast %147 : vector<1x32x64xf32> to vector<32x64xf32>
    %cst_61 = arith.constant dense<0.000000e+00> : vector<8x64xf32>
    %149 = tpu.matmul %146, %148, %cst_61 {dimension_numbers = #tpu.dot_dimension_numbers<[1], [0], [0], [1], [0, 0, 1, 1], [], []>} : vector<8x32xf32>, vector<32x64xf32>, vector<8x64xf32> -> vector<8x64xf32>
    %c0_62 = arith.constant 0 : index
    %c0_63 = arith.constant 0 : index
    %c0_64 = arith.constant 0 : index
    %150 = vector.load %arg11[%c0_62, %c0_63, %c0_64] : memref<1x1x64xf32, #tpu.memory_space<vmem>>, vector<1x1x64xf32>
    %151 = vector.shape_cast %150 : vector<1x1x64xf32> to vector<1x64xf32>
    %152 = vector.broadcast %151 : vector<1x64xf32> to vector<8x64xf32>
    %153 = arith.addf %149, %152 : vector<8x64xf32>
    %cst_65 = arith.constant 5.000000e-01 : f32
    %154 = vector.broadcast %cst_65 : f32 to vector<8x64xf32>
    %155 = arith.mulf %154, %153 : vector<8x64xf32>
    %cst_66 = arith.constant 0.707106769 : f32
    %156 = vector.broadcast %cst_66 : f32 to vector<8x64xf32>
    %157 = arith.mulf %153, %156 : vector<8x64xf32>
    %158 = math.erf %157 : vector<8x64xf32>
    %cst_67 = arith.constant 1.000000e+00 : f32
    %159 = vector.broadcast %cst_67 : f32 to vector<8x64xf32>
    %160 = arith.addf %159, %158 : vector<8x64xf32>
    %161 = arith.mulf %155, %160 : vector<8x64xf32>
    %c0_68 = arith.constant 0 : index
    %c0_69 = arith.constant 0 : index
    %c0_70 = arith.constant 0 : index
    %162 = vector.load %arg12[%c0_68, %c0_69, %c0_70] : memref<1x64x32xf32, #tpu.memory_space<vmem>>, vector<1x64x32xf32>
    %163 = vector.shape_cast %162 : vector<1x64x32xf32> to vector<64x32xf32>
    %cst_71 = arith.constant dense<0.000000e+00> : vector<8x32xf32>
    %164 = tpu.matmul %161, %163, %cst_71 {dimension_numbers = #tpu.dot_dimension_numbers<[1], [0], [0], [1], [0, 0, 1, 1], [], []>} : vector<8x64xf32>, vector<64x32xf32>, vector<8x32xf32> -> vector<8x32xf32>
    %165 = arith.addf %120, %164 : vector<8x32xf32>
    %c0_72 = arith.constant 0 : index
    %c0_73 = arith.constant 0 : index
    %c0_74 = arith.constant 0 : index
    %166 = vector.load %arg13[%c0_72, %c0_73, %c0_74] : memref<1x1x32xf32, #tpu.memory_space<vmem>>, vector<1x1x32xf32>
    %167 = vector.shape_cast %166 : vector<1x1x32xf32> to vector<1x32xf32>
    %168 = vector.broadcast %167 : vector<1x32xf32> to vector<8x32xf32>
    %169 = arith.addf %165, %168 : vector<8x32xf32>
    %c0_75 = arith.constant 0 : index
    %c0_76 = arith.constant 0 : index
    %170 = vector.load %arg15[%c0_75, %c0_76] : memref<8x32xf32, #tpu.memory_space<vmem>>, vector<8x32xf32>
    tpu.vector_store %arg15[%c0_75, %c0_76], %169 {strides = array<i32>} : memref<8x32xf32, #tpu.memory_space<vmem>>, vector<8x32xf32>,
    %c1_i32 = arith.constant 1 : i32
    %171 = arith.cmpi eq, %arg1, %c1_i32 : i32
    %172 = arith.extui %171 : i1 to i32
    %c0_i32_77 = arith.constant 0 : i32
    %173 = arith.cmpi ne, %172, %c0_i32_77 : i32
    scf.if %173 {
      %c0_78 = arith.constant 0 : index
      %c0_79 = arith.constant 0 : index
      %c0_80 = arith.constant 0 : index
      %174 = vector.load %arg14[%c0_78, %c0_79, %c0_80] : memref<1x8x32xf32, #tpu.memory_space<vmem>>, vector<1x8x32xf32>
      %175 = vector.shape_cast %174 : vector<1x8x32xf32> to vector<8x32xf32>
      %176 = vector.shape_cast %169 : vector<8x32xf32> to vector<1x8x32xf32>
      tpu.vector_store %arg14[%c0_78, %c0_79, %c0_80], %176 {strides = array<i32>} : memref<1x8x32xf32, #tpu.memory_space<vmem>>, vector<1x8x32xf32>,
    } else {
    }
    return
  }
  func.func @transform_0(%arg0: i32, %arg1: i32) -> (i32, i32, i32) {
    %c0_i32 = arith.constant 0 : i32
    %c0_i32_0 = arith.constant 0 : i32
    %c0_i32_1 = arith.constant 0 : i32
    return %arg0, %c0_i32, %c0_i32_0 : i32, i32, i32
  }
  func.func @transform_1(%arg0: i32, %arg1: i32) -> (i32, i32, i32) {
    %c0_i32 = arith.constant 0 : i32
    %c0_i32_0 = arith.constant 0 : i32
    %c0_i32_1 = arith.constant 0 : i32
    return %arg1, %c0_i32, %c0_i32_0 : i32, i32, i32
  }
  func.func @transform_2(%arg0: i32, %arg1: i32) -> (i32, i32, i32) {
    %c0_i32 = arith.constant 0 : i32
    %c0_i32_0 = arith.constant 0 : i32
    %c0_i32_1 = arith.constant 0 : i32
    return %arg1, %c0_i32, %c0_i32_0 : i32, i32, i32
  }
  func.func @transform_3(%arg0: i32, %arg1: i32) -> (i32, i32, i32) {
    %c0_i32 = arith.constant 0 : i32
    %c0_i32_0 = arith.constant 0 : i32
    %c0_i32_1 = arith.constant 0 : i32
    return %arg1, %c0_i32, %c0_i32_0 : i32, i32, i32
  }
  func.func @transform_4(%arg0: i32, %arg1: i32) -> (i32, i32, i32) {
    %c0_i32 = arith.constant 0 : i32
    %c0_i32_0 = arith.constant 0 : i32
    %c0_i32_1 = arith.constant 0 : i32
    return %arg1, %c0_i32, %c0_i32_0 : i32, i32, i32
  }
  func.func @transform_5(%arg0: i32, %arg1: i32) -> (i32, i32, i32) {
    %c0_i32 = arith.constant 0 : i32
    %c0_i32_0 = arith.constant 0 : i32
    %c0_i32_1 = arith.constant 0 : i32
    return %arg1, %c0_i32, %c0_i32_0 : i32, i32, i32
  }
  func.func @transform_6(%arg0: i32, %arg1: i32) -> (i32, i32, i32) {
    %c0_i32 = arith.constant 0 : i32
    %c0_i32_0 = arith.constant 0 : i32
    %c0_i32_1 = arith.constant 0 : i32
    return %arg1, %c0_i32, %c0_i32_0 : i32, i32, i32
  }
  func.func @transform_7(%arg0: i32, %arg1: i32) -> (i32, i32, i32) {
    %c0_i32 = arith.constant 0 : i32
    %c0_i32_0 = arith.constant 0 : i32
    %c0_i32_1 = arith.constant 0 : i32
    return %arg1, %c0_i32, %c0_i32_0 : i32, i32, i32
  }
  func.func @transform_8(%arg0: i32, %arg1: i32) -> (i32, i32, i32) {
    %c0_i32 = arith.constant 0 : i32
    %c0_i32_0 = arith.constant 0 : i32
    %c0_i32_1 = arith.constant 0 : i32
    return %arg1, %c0_i32, %c0_i32_0 : i32, i32, i32
  }
  func.func @transform_9(%arg0: i32, %arg1: i32) -> (i32, i32, i32) {
    %c0_i32 = arith.constant 0 : i32
    %c0_i32_0 = arith.constant 0 : i32
    %c0_i32_1 = arith.constant 0 : i32
    return %arg1, %c0_i32, %c0_i32_0 : i32, i32, i32
  }
  func.func @transform_10(%arg0: i32, %arg1: i32) -> (i32, i32, i32) {
    %c0_i32 = arith.constant 0 : i32
    %c0_i32_0 = arith.constant 0 : i32
    %c0_i32_1 = arith.constant 0 : i32
    return %arg1, %c0_i32, %c0_i32_0 : i32, i32, i32
  }
  func.func @transform_11(%arg0: i32, %arg1: i32) -> (i32, i32, i32) {
    %c0_i32 = arith.constant 0 : i32
    %c0_i32_0 = arith.constant 0 : i32
    %c0_i32_1 = arith.constant 0 : i32
    return %arg1, %c0_i32, %c0_i32_0 : i32, i32, i32
  }
  func.func @transform_12(%arg0: i32, %arg1: i32) -> (i32, i32, i32) {
    %c0_i32 = arith.constant 0 : i32
    %c0_i32_0 = arith.constant 0 : i32
    %c0_i32_1 = arith.constant 0 : i32
    return %arg0, %c0_i32, %c0_i32_0 : i32, i32, i32
  }
}

</mosaic_0001>

<bundles_post_ra>
// kernel: tpu_custom_call.1
= control target key start
LH: loop header
LB: loop body
LE: loop exit
PB: predicated region body
PF: predicated region fallthrough
CT: control target
= control target key end

     0   :  { %s3073_s0 = inlined_call_operand.hbm [shape: f32[2,8,32], index: 0, kind: input, shape index: {}]   ;;  %s3074_s1 = inlined_call_operand.vmem [shape: f32[2,1,32], index: 1, kind: input, shape index: {}]   ;;  %s3075_s2 = inlined_call_operand.vmem [shape: f32[2,1,32], index: 2, kind: input, shape index: {}]   ;;  %s3076_s3 = inlined_call_operand.vmem [shape: f32[2,32,96], index: 3, kind: input, shape index: {}]   ;;  %s3077_s4 = inlined_call_operand.vmem [shape: f32[2,32,32], index: 4, kind: input, shape index: {}]   ;;  %s3078_s5 = inlined_call_operand.vmem [shape: f32[2,1,32], index: 5, kind: input, shape index: {}]   ;;  %s3079_s6 = inlined_call_operand.vmem [shape: f32[2,1,32], index: 6, kind: input, shape index: {}]   ;;  %s3080_s7 = inlined_call_operand.vmem [shape: f32[2,1,32], index: 7, kind: input, shape index: {}]   ;;  %s3081_s8 = inlined_call_operand.vmem [shape: f32[2,32,64], index: 8, kind: input, shape index: {}]   ;;  %s3082_s9 = inlined_call_operand.vmem [shape: f32[2,1,64], index: 9, kind: input, shape index: {}]   ;;  %s3083_s10 = inlined_call_operand.vmem [shape: f32[2,64,32], index: 10, kind: input, shape index: {}]   ;;  %s3084_s11 = inlined_call_operand.vmem [shape: f32[2,1,32], index: 11, kind: input, shape index: {}]   ;;  %s3085_s12 = inlined_call_operand.hbm [shape: f32[2,8,32], index: 12, kind: output, shape index: {}]  }
   0x1   :  { %3100 = sst [smem:[#allocation22_spill]] %s3073_s0 }
   0x2   :  { %3101 = sst [smem:[#allocation23_spill]] %s3076_s3 }
   0x3   :  { %3102 = sst [smem:[#allocation24_spill]] %s3077_s4 }
   0x4   :  { %3103 = sst [smem:[#allocation25_spill]] %s3078_s5 }
   0x5   :  { %3104 = sst [smem:[#allocation26_spill]] %s3085_s12 }
   0x6   :  { %17 = vsyncpa [#allocation4], 0 }
   0x7   :  { %19 = vsyncpa [#allocation4 + $0x1], 0 }
   0x8   :  { %20 = vsyncpa [#allocation5], 0 }
   0x9   :  { %22 = vsyncpa [#allocation5 + $0x1], 0  ;;  %s2673_s21 = smov 0   ;;  %s2675_s22 = smov 0  }
   0xa   :  { %s2677_s23 = smov 0   ;;  %s2679_s24 = smov 0  }
   0xb   :  { %s2681_s25 = smov 0   ;;  %s2683_s26 = smov 0  }
   0xc   :  { %s2685_s27 = smov 0   ;;  %s2687_s28 = smov 0  }
   0xd LB: > { %3105 = sst [smem:[#allocation9_spill]] %s2562_s21  ;;  %s2127_s29 = sadd.s32 4294967295, %s2590_s28   ;;  %s2590_s28 = sphi %s2687_s28, %s28_s28   ;;  %s2586_s27 = sphi %s2685_s27, %s3149_s27   ;;  %s2582_s26 = sphi %s2683_s26, %s3148_s26   ;;  %s2578_s25 = sphi %s2681_s25, %s3147_s25   ;;  %s2574_s24 = sphi %s2679_s24, %s3146_s24   ;;  %s2570_s23 = sphi %s2677_s23, %s3145_s23   ;;  %s2566_s22 = sphi %s2675_s22, %s3144_s22   ;;  %s2562_s21 = sphi %s2673_s21, %s3143_s21  }
   0xe   : > { %3106 = sst [smem:[#allocation10_spill]] %s2566_s22  ;;  %s2128_s30 = sadd.s32 4294967294, %s2590_s28  }
   0xf   : > { %3107 = sst [smem:[#allocation11_spill]] %s2570_s23  ;;  %s37_s13 = sadd.s32 1, %s2582_s26 }
  0x10   : > { %3108 = sst [smem:[#allocation12_spill]] %s2578_s25  ;;  %s40_s14 = sadd.s32 1, %s2586_s27 }
  0x11   : > { %3109 = sst [smem:[#allocation13_spill]] %s2582_s26  ;;  %p38_p0 = scmp.ge.s32.totalorder %s37_s13, 2 }
  0x12   : > { %3110 = sst [smem:[#allocation14_spill]] %s2586_s27  ;;  %s47_s15 = sadd.s32 1, %s2570_s23 }
  0x13   : > { %3111 = sst [smem:[#allocation15_spill]] %s2590_s28  ;;  %p54_p1 = scmp.ne.s32.totalorder %s2570_s23, %s2566_s22 }
  0x14   : > { %p55_p2 = scmp.eq.s32.totalorder %s2590_s28, 0  ;;  %s3151_s13 = smov (%p38_p0, %s37_s13), 0 }
  0x15   : > { %3112 = sst [smem:[#allocation16_spill]] %s3151_s13  ;;  %s3153_s14 = smov (!%p38_p0, %s40_s14), %s2586_s27 }
  0x16   : > { %p2724_p3 = por %p55_p2, %p54_p1  ;;  %p60_p4 = scmp.ne.s32.totalorder %s2566_s22, %s2562_s21 }
  0x17   : > { %p42_p5 = scmp.ge.s32.totalorder %s3153_s14, 2  ;;  %p61_p6 = scmp.eq.s32.totalorder %s2127_s29, 0 }
  0x18   : > { %p370_p7 = scmp.eq.s32.totalorder %s2127_s29, 3  ;;  %p376_p8 = scmp.eq.s32.totalorder %s2128_s30, 3 }
  0x19   : > { %s3155_s14 = smov (%p42_p5, %s3153_s14), 0  ;;  %p2732_p9 = por %p61_p6, %p60_p4 }
  0x1a   : > { %3114 = sst [smem:[#allocation17_spill]] %s3155_s14  ;;  %p2736_p10 = por %p370_p7, %p54_p1 }
  0x1b   : > { %s44_s19 = ssub.s32 %s2586_s27, %s3155_s14  ;;  %p2742_p11 = por %p376_p8, %p60_p4 }
  0x1c   : > { %s3116_s18 = scalar_select %p2736_p10, 1, 0 }
  0x1d   : > { %s3118_s20 = scalar_select %p2742_p11, 1, 0 }
  0x1e   : > { %3117 = sst [smem:[#allocation18_spill]] %s3116_s18  ;;  %p45_p12 = scmp.eq.s32.totalorder %s44_s19, 0 }
  0x1f   : > { %3119 = sst [smem:[#allocation19_spill]] %s3118_s20  ;;  %p2360_p13 = scmp.lt.s32.totalorder %s2590_s28, 4 }
  0x20   : > { %s396_s29 = sand.u32 1, %s2570_s23   ;;  %s2132_s26 = sshll.u32 %s2586_s27, 7 }
  0x21   : > { %s2749_s30 = scalar_select %p45_p12, %s2570_s23, %s47_s15  }
  0x22   : > { %s2131_s13 = sshll.u32 %s396_s29, 3  ;;  %s3121_s0 = sld [smem:[#allocation22_spill]] }
  0x23   : > { %3120 = sst [smem:[#allocation20_spill]] %s2749_s30  ;;  %s400_s14 = scalar_lea.vmem [#allocation3], %s2131_s13 }
  0x24   : > { %s407_s18 = sshll.u32 %s400_s14, 4  ;;  %p2761_p0 = pnand %p2360_p13, %p2724_p3  ;;  %s2757_s18 = int_to_ptr.vmem [resolvable:$true] %s407_s18 }
  0x25   : > { %s397_s12 = scalar_lea.sflag [#allocation4], %s396_s29 }
  0x26   : > { %p2464_p5 = pneg %p2761_p0 }
  0x28   : > { %s2755_s25 = scalar_lea.hbm %s3121_s0, %s2132_s26  ;;  %s2467_s14 = scalar_lea.hbm %s3121_s0, 256 }
  0x29   : > { %s2462_s21 = scalar_lea.hbm %s2755_s25, 128  ;;  %p2468_p3 = scmp.lt.u32.totalorder %s2755_s25, %s3121_s0 }
  0x2a   : > { %p2463_p4 = scmp.ne.s32.totalorder %s2755_s25, %s2462_s21  ;;  %p2469_p8 = scmp.lt.u32.totalorder %s2467_s14, %s2462_s21 }
  0x2b   : > { %p2471_p13 = scmp.lt.u32.totalorder %s2462_s21, %s2755_s25 }
  0x2c   : > { %p2465_p6 = pnand %p2464_p5, %p2463_p4  ;;  %p2470_p12 = por %p2469_p8, %p2468_p3 }
  0x2e   : > { %p2466_p7 = pneg %p2465_p6  ;;  %p2472_p1 = por %p2471_p13, %p2470_p12 }
  0x30   : > { %p2473_p2 = pnand %p2472_p1, %p2466_p7 }
  0x32   : > { %2476 = shalt.err (!%p2473_p2)
}
  0x33   : > { %s2477_s29 = scalar_lea.vmem %s2757_s18, 128  ;;  %s2592_s26 = smov [#allocation3]  }
  0x34   : > { %p2478_p4 = scmp.ne.s32.totalorder %s2757_s18, %s2477_s29  ;;  %s2482_s13 = sshll.u32 %s2592_s26, 4  ;;  %s2483_s13 = int_to_ptr.vmem [resolvable:$false] %s2482_s13 }
  0x35   : > { %s2484_s15 = scalar_lea.vmem %s2483_s13, 256  ;;  %p2485_p10 = scmp.lt.s32.totalorder %s2757_s18, %s2483_s13 }
  0x36   : > { %p2480_p6 = pnand %p2478_p4, %p2464_p5  ;;  %p2486_p3 = scmp.lt.s32.totalorder %s2484_s15, %s2477_s29 }
  0x38   : > { %p2481_p11 = pneg %p2480_p6  ;;  %p2487_p8 = por %p2486_p3, %p2485_p10 }
  0x3a   : > { %p2488_p12 = pnand %p2487_p8, %p2481_p11 }
  0x3c   : > { %2491 = shalt.err (!%p2488_p12)
}
  0x3d   : > { %2355 = dma.hbm_to_vmem [thread:$0]  (!%p2761_p0), %s2755_s25, 128, %s2757_s18, %s397_s12  }
  0x3e   : > { %p3123_p1 = scmp.lt.s32.totalorder %s2590_s28, 5  ;;  %p3124_p2 = scmp.ge.s32.totalorder %s2590_s28, 1 }
  0x40   : > { %p487_p5 = pnand %p3124_p2, %p3123_p1 }
  0x42   : > { %490 = sbr.rel (%p487_p5) target bundleno = 3763 (0xeb3), region = 68 }
  0x49   : > { %s2797_s21 = sand.u32 1, %s2566_s22  }
  0x4a   : > { %3125 = sst [smem:[#allocation21_spill]] %s2797_s21  ;;  %s2134_s14 = sshll.u32 %s2797_s21, 3 }
  0x4b   : > { %s493_s16 = scalar_lea.sflag [#allocation4], %s2797_s21  ;;  %s496_s29 = scalar_lea.vmem [#allocation3], %s2134_s14 }
  0x4c   : > { %2553 = dma.done.wait (%p2732_p9), %s493_s16, 128  }
  0x4d   : > { %2555 = vsyncadd (%p2732_p9), %s493_s16, 4294967168  ;;  %p578_p10 = scmp.lt.s32.totalorder %s2574_s24, 1  ;;  %s3127_s3 = sld [smem:[#allocation23_spill]] }
  0x4e   : > { %s3128_s4 = sld [smem:[#allocation24_spill]]  ;;  %s2859_s13 = scalar_lea.vmem [#allocation6], %s2134_s14 }
  0x4f   : > { %s2807_s25 = scalar_select %p578_p10, %s2574_s24, 1 }
  0x50   : > { %p2144_p9 = scmp.ne.s32.totalorder %s2574_s24, 0 }
  0x51   : > { %s2176_s15 = sshll.u32 %s2807_s25, 5  ;;  %s602_s21 = scalar_lea.vmem %s3080_s7, %s2807_s25  ;;  %v623_v0 = vld [vmem:[%s496_s29] sm:$0xff] (!%p2144_p9)  ;;  %vm624_vm0 = vcmask (!%p2144_p9), 261120  }
  0x52   : > { %s2843_s27 = scalar_lea.vmem %s3081_s8, %s2176_s15  ;;  %s2179_s22 = sshll.u32 %s2807_s25, 6  ;;  %625 = vst.msk [vmem:[#allocation2] sm:$0xff] (!%p2144_p9), %vm624_vm0, %v623_v0 }
  0x53   : > { %s2825_s19 = scalar_lea.vmem %s3127_s3, %s2176_s15  ;;  %s610_s3 = scalar_lea.vmem %s3082_s9, %s2807_s25 }
  0x54   : > { %s2830_s20 = scalar_lea.vmem %s3128_s4, %s2176_s15  ;;  %s618_s5 = scalar_lea.vmem %s3084_s11, %s2807_s25 }
  0x55   : > { %s2857_s17 = scalar_lea.vmem %s3083_s10, %s2179_s22  ;;  %622 = sbr.rel (%p2144_p9) target bundleno = 92 (0x5c), region = 76 }
  0x5c PF: > { %v2862_v1 = vld [vmem:[#allocation2] sm:$0xff]  ;;  %vm629_vm1 = vcmask 261120   ;;  %v659_v9 = vld [vmem:[%s2825_s19 + $0x8] sm:$0xff]  ;;  %v660_v10 = vld [vmem:[%s2825_s19 + $0x10] sm:$0xff]  ;;  %v2593_v11 = vmov 0.0|0.0   ;;  %vm2594_vm2 = vmmov 0   ;;  %s3129_s29 = scalar_lea.vmem %s3074_s1, %s2807_s25  ;;  %s3130_s26 = scalar_lea.vmem %s3075_s2, %s2807_s25 }
  0x5d   : > { %v630_v2 = vsel %vm629_vm1, %v2862_v1, 0.0  ;;  %v658_v8 = vld [vmem:[%s2825_s19] sm:$0xff]  ;;  %2324 = vmatprep.subr.bf16.mxu0 %v2593_v11  ;;  %v661_v13 = vld [vmem:[%s2825_s19 + $0x18] sm:$0xff]  ;;  %v2595_v14 = vmov 0.0   ;;  %s2596_s0 = smov 120   ;;  %s2597_s16 = smov 96  }
  0x5e   : > { %631 = vadd.xlane.f32.xlu0 %v630_v2  ;;  %v2325_v12 = vpack.c.bf16 %v659_v9, %v658_v8  ;;  %2231 = vmatprep.mubr.msk.f32.mxu0 %vm2594_vm2, %v2595_v14  ;;  %v2328_v15 = vpack.c.bf16 %v661_v13, %v660_v10  ;;  %v2145_v20 = vld [vmem:[%s3129_s29] ss:$0 sm:$0xff]  ;;  %s2598_s30 = smov 88   ;;  %vm742_vm3 = vcmask 64512   ;;  %s2599_s18 = smov 56   ;;  %v736_v48 = vld [vmem:[%s2830_s20 + $0x8] sm:$0xff] }
  0x5f   : > { %2239 = vmatprep.subr.mxu1 %v2595_v14  ;;  %2241 = vmatprep.mubr.msk.f32.mxu1 %vm2594_vm2, %v2595_v14  ;;  %v2146_v22 = vld [vmem:[%s3130_s26] ss:$0 sm:$0xff]  ;;  %s2600_s22 = smov 64   ;;  %s2601_s23 = smov 80   ;;  %vm1832_vm4 = vcmask 523264  }
  0x60   : > { %2326 = vmatpush3.bf16.msra.mxu0 %v2325_v12  ;;  %s2602_s28 = smov 112   ;;  %v735_v57 = vld [vmem:[%s2830_s20] sm:$0xff]  ;;  %s2603_s12 = smov 48  }
  0x61   : > { %2327 = vmatprep.subr.bf16.mxu0 %v2593_v11  ;;  %s2604_s4 = smov 104   ;;  %s2605_s14 = smov 72  }
  0x62   : > { %s2606_s29 = smov 40   ;;  %s3131_s19 = sld [smem:[#allocation25_spill]] }
  0x63   : > { %p2171_p11 = scmp.ne.s32.totalorder %s2574_s24, 1 }
  0x64   : > { %2329 = vmatpush3.bf16.msra.mxu0 %v2328_v15 }
  0x65   : > { %2234 = vmatprep.subr.mxu0 %v2595_v14 }
  0x68   : > { %s3132_s26 = scalar_lea.vmem %s3131_s19, %s2807_s25 }
  0xeb   : > { %v632_v3 = vpop.xlane.xlu0 %631 }
  0xec   : > { %v634_v4 = vmul.f32 0.03125, %v632_v3 }
  0xee   : > { %v635_v5 = vsub.f32 %v2862_v1, %v634_v4 }
  0xf0   : > { %v636_v6 = vmul.f32 %v635_v5, %v635_v5 }
  0xf2   : > { %v637_v7 = vsel %vm629_vm1, %v636_v6, 0.0 }
  0xf3   : > { %638 = vadd.xlane.f32.xlu0 %v637_v7 }
 0x180   : > { %v639_v16 = vpop.xlane.xlu0 %638 }
 0x181   : > { %v640_v17 = vmul.f32 0.03125, %v639_v16 }
 0x183   : > { %v641_v18 = vadd.f32 1e-05, %v640_v17 }
 0x185   : > { %2440 = vrsqrt.f32 %v641_v18 }
 0x18f   : > { %v2441_v19 = vpop.eup %2440 }
 0x190   : > { %v643_v21 = vmul.f32 %v2441_v19, %v635_v5 }
 0x192   : > { %v650_v23 = vmul.f32 %v2145_v20, %v643_v21 }
 0x194   : > { %v657_v24 = vadd.f32 %v2146_v22, %v650_v23  ;;  %v737_v23 = vld [vmem:[%s2830_s20 + $0x10] sm:$0xff] }
 0x196   : > { %2232 = vmatmul.mubr.msk.f32.vlgmr.msra.gmra.mrb[0].mxu0 %vm629_vm1, %v657_v24 }
 0x197   : > { %2236 = vmatprep.mubr.msk.f32.mxu0 %vm2594_vm2, %v2595_v14 }
 0x269   : > { %v2893_v25 = vpop.f32.mrb[0].mxu0 }
 0x26a   : > { %905 = vrot.lane.b32.xlu0 %v2893_v25, %s2596_s0  ;;  %740 = vrot.lane.b32.xlu1 %v2893_v25, %s2597_s16  ;;  %v2233_v26 = vpop.f32.mrb[1].mxu0 }
 0x26e   : > { %907 = vrot.lane.b32.xlu1 %v2893_v25, %s2598_s30  ;;  %s3133_s30 = scalar_lea.vmem %s3079_s6, %s2807_s25 }
 0x2dc   : > { %v741_v27 = vpop.permute.xlu1 %740  ;;  %v906_v29 = vpop.permute.xlu0 %905 }
 0x2dd   : > { %2235 = vmatpush3.xpose.msk.msra.mxu0 %vm742_vm3, %v741_v27 }
 0x2de   : > { %2244 = vmatprep.subr.mxu0 %v2595_v14 }
 0x2e0   : > { %2237 = vmatmul.mubr.msk.f32.vlgmr.msra.gmra.mrb[2].mxu0 %vm742_vm3, %v2893_v25  ;;  %v908_v28 = vpop.permute.xlu1 %907 }
 0x2e1   : > { %2245 = vmatpush3.xpose.msk.msra.mxu0 %vm742_vm3, %v908_v28  ;;  %2246 = vmatprep.mubr.msk.f32.mxu0 %vm2594_vm2, %v2595_v14 }
 0x2e2   : > { %2254 = vmatprep.subr.mxu0 %v2595_v14 }
 0x2e4   : > { %2247 = vmatmul.mubr.msk.f32.vlgmr.msra.gmra.mrb[4].mxu0 %vm742_vm3, %v906_v29 }
 0x2e5   : > { %2256 = vmatprep.mubr.msk.f32.mxu0 %vm2594_vm2, %v2595_v14  ;;  %2255 = vmatpush3.msra.mxu0 %v736_v48  ;;  %v2164_v48 = vld [vmem:[%s3132_s26] ss:$0 sm:$0xff] }
 0x2e6   : > { %2264 = vmatprep.subr.mxu0 %v2595_v14 }
 0x3b3   : > { %v813_v30 = vpop.f32.mrb[2].mxu0 }
 0x3b4   : > { %v817_v31 = vmul.f32 0.35355338, %v813_v30  ;;  %v2238_v32 = vpop.f32.mrb[3].mxu0 }
 0x3b6   : > { %v818_v33 = vsel %vm742_vm3, %v817_v31, -inf }
 0x3b7   : > { %819 = vmax.xlane.f32.xlu1 %v818_v33  ;;  %v979_v34 = vpop.f32.mrb[4].mxu0 }
 0x3b8   : > { %v983_v35 = vmul.f32 0.35355338, %v979_v34  ;;  %v2248_v36 = vpop.f32.mrb[5].mxu0 }
 0x3b9   : > { %v738_v36 = vld [vmem:[%s2830_s20 + $0x18] sm:$0xff] }
 0x3ba   : > { %v984_v37 = vsel %vm742_vm3, %v983_v35, -inf }
 0x3bb   : > { %985 = vmax.xlane.f32.xlu0 %v984_v37 }
 0x3d1   : > { %995 = vrot.lane.b32.xlu0 %v2893_v25, %s2599_s18 }
 0x444   : > { %v820_v38 = vpop.xlane.xlu1 %819 }
 0x445   : > { %v821_v39 = vsub.f32 %v817_v31, %v820_v38 }
 0x447   : > { %v822_v40 = vmul.f32 1.442695, %v821_v39 }
 0x448   : > { %v986_v41 = vpop.xlane.xlu0 %985 }
 0x449   : > { %2442 = vpow2.f32 %v822_v40  ;;  %v987_v42 = vsub.f32 %v983_v35, %v986_v41 }
 0x44b   : > { %v988_v43 = vmul.f32 1.442695, %v987_v42 }
 0x44c   : > { %v996_v54 = vpop.permute.xlu0 %995 }
 0x44d   : > { %2444 = vpow2.f32 %v988_v43 }
 0x453   : > { %v2443_v44 = vpop.eup %2442 }
 0x454   : > { %v824_v45 = vsel %vm742_vm3, %v2443_v44, 0.0 }
 0x455   : > { %825 = vadd.xlane.f32.xlu1 %v824_v45 }
 0x457   : > { %v2445_v46 = vpop.eup %2444 }
 0x458   : > { %v990_v47 = vsel %vm742_vm3, %v2445_v46, 0.0 }
 0x459   : > { %991 = vadd.xlane.f32.xlu1 %v990_v47 }
 0x46a   : > { %829 = vrot.lane.b32.xlu1 %v2893_v25, %s2600_s22 }
 0x46e   : > { %1219 = vrot.lane.b32.xlu1 %v2893_v25, %s2601_s23 }
 0x472   : > { %1217 = vrot.lane.b32.xlu1 %v2893_v25, %s2602_s28 }
 0x4e2   : > { %v826_v49 = vpop.xlane.xlu1 %825 }
 0x4e3   : > { %2446 = vrcp.f32 %v826_v49 }
 0x4e6   : > { %v992_v50 = vpop.xlane.xlu1 %991 }
 0x4e7   : > { %2448 = vrcp.f32 %v992_v50 }
 0x4ea   : > { %v830_v51 = vpop.permute.xlu1 %829 }
 0x4eb   : > { %2240 = vmatpush3.msra.mxu1 %v830_v51 }
 0x4ec   : > { %2249 = vmatprep.subr.mxu1 %v2595_v14 }
 0x4ed   : > { %v2447_v52 = vpop.eup %2446 }
 0x4ee   : > { %v828_v53 = vmul.f32 %v2447_v52, %v2443_v44  ;;  %v1220_v60 = vpop.permute.xlu1 %1219 }
 0x4f0   : > { %2242 = vmatmul.mubr.msk.f32.vlgmr.msra.gmra.mrb[0].mxu1 %vm742_vm3, %v828_v53 }
 0x4f1   : > { %v2449_v55 = vpop.eup %2448  ;;  %2250 = vmatpush3.msra.mxu1 %v996_v54  ;;  %2251 = vmatprep.mubr.msk.f32.mxu1 %vm2594_vm2, %v2595_v14 }
 0x4f2   : > { %v994_v56 = vmul.f32 %v2449_v55, %v2445_v46  ;;  %2259 = vmatprep.subr.mxu1 %v2595_v14  ;;  %v1218_v63 = vpop.permute.xlu1 %1217 }
 0x4f4   : > { %2252 = vmatmul.mubr.msk.f32.vlgmr.msra.gmra.mrb[2].mxu1 %vm742_vm3, %v994_v56  ;;  %v1735_v56 = vld [vmem:[%s2843_s27] sm:$0xff] }
 0x4f5   : > { %2261 = vmatprep.mubr.msk.f32.mxu1 %vm2594_vm2, %v2595_v14  ;;  %2260 = vmatpush3.msra.mxu1 %v735_v57  ;;  %v1736_v57 = vld [vmem:[%s2843_s27 + $0x8] sm:$0xff] }
 0x4f6   : > { %2269 = vmatprep.subr.mxu1 %v2595_v14 }
 0x5c3   : > { %v901_v58 = vpop.f32.mrb[0].mxu1 }
 0x5c4   : > { %v2243_v59 = vpop.f32.mrb[1].mxu1  ;;  %2262 = vmatmul.mubr.msk.f32.vlgmr.msra.gmra.mrb[4].mxu1 %vm742_vm3, %v901_v58  ;;  %v2331_v58 = vpack.c.bf16 %v1736_v57, %v1735_v56 }
 0x5c5   : > { %2271 = vmatprep.mubr.msk.f32.mxu1 %vm2594_vm2, %v2595_v14  ;;  %v1738_v59 = vld [vmem:[%s2843_s27 + $0x18] sm:$0xff] }
 0x5c7   : > { %v1067_v61 = vpop.f32.mrb[2].mxu1 }
 0x5c8   : > { %v2253_v62 = vpop.f32.mrb[3].mxu1  ;;  %2257 = vmatmul.mubr.msk.f32.vlgmr.msra.gmra.mrb[6].mxu0 %vm742_vm3, %v1067_v61 }
 0x5c9   : > { %2265 = vmatpush3.xpose.msk.msra.mxu0 %vm742_vm3, %v1220_v60  ;;  %2266 = vmatprep.mubr.msk.f32.mxu0 %vm2594_vm2, %v2595_v14 }
 0x5ca   : > { %2274 = vmatprep.subr.mxu0 %v2595_v14 }
 0x5cc   : > { %2267 = vmatmul.mubr.msk.f32.vlgmr.msra.gmra.mrb[8].mxu0 %vm742_vm3, %v1218_v63 }
 0x5cd   : > { %2276 = vmatprep.mubr.msk.f32.mxu0 %vm2594_vm2, %v2595_v14  ;;  %2275 = vmatpush3.msra.mxu0 %v737_v23 }
 0x5ce   : > { %2284 = vmatprep.subr.mxu0 %v2595_v14 }
 0x697   : > { %v1213_v0 = vpop.f32.mrb[4].mxu1 }
 0x698   : > { %v2263_v2 = vpop.f32.mrb[5].mxu1 }
 0x699   : > { %v2165_v2 = vld [vmem:[%s3133_s30] ss:$0 sm:$0xff] }
 0x69b   : > { %v1140_v3 = vpop.f32.mrb[6].mxu0 }
 0x69c   : > { %v1214_v4 = vadd.f32 %v1213_v0, %v1140_v3  ;;  %v2258_v5 = vpop.f32.mrb[7].mxu0 }
 0x69f   : > { %v1291_v6 = vpop.f32.mrb[8].mxu0 }
 0x6a0   : > { %v1295_v7 = vmul.f32 0.35355338, %v1291_v6  ;;  %v2268_v8 = vpop.f32.mrb[9].mxu0 }
 0x6a1   : > { %v1825_v8 = vld [vmem:[%s2857_s17 + $0x8] sm:$0xff] }
 0x6a2   : > { %v1296_v9 = vsel %vm742_vm3, %v1295_v7, -inf }
 0x6a3   : > { %1297 = vmax.xlane.f32.xlu1 %v1296_v9 }
 0x6b4   : > { %1307 = vrot.lane.b32.xlu1 %v2893_v25, %s2603_s12 }
 0x6b8   : > { %1457 = vrot.lane.b32.xlu1 %v2893_v25, %s2604_s4 }
 0x730   : > { %v1298_v10 = vpop.xlane.xlu1 %1297 }
 0x731   : > { %v1299_v12 = vsub.f32 %v1295_v7, %v1298_v10  ;;  %v1824_v7 = vld [vmem:[%s2857_s17] sm:$0xff]  ;;  %v1826_v10 = vld [vmem:[%s2857_s17 + $0x10] sm:$0xff] }
 0x732   : > { %v2337_v9 = vpack.c.bf16 %v1825_v8, %v1824_v7 }
 0x733   : > { %v1300_v13 = vmul.f32 1.442695, %v1299_v12  ;;  %v1827_v12 = vld [vmem:[%s2857_s17 + $0x18] sm:$0xff] }
 0x734   : > { %v1308_v15 = vpop.permute.xlu1 %1307 }
 0x735   : > { %2450 = vpow2.f32 %v1300_v13  ;;  %2270 = vmatpush3.msra.mxu1 %v1308_v15  ;;  %v2340_v13 = vpack.c.bf16 %v1827_v12, %v1826_v10  ;;  %v1828_v15 = vld [vmem:[%s2857_s17 + $0x20] sm:$0xff] }
 0x736   : > { %2279 = vmatprep.subr.mxu1 %v2595_v14 }
 0x738   : > { %v1458_v22 = vpop.permute.xlu1 %1457 }
 0x73f   : > { %v2451_v16 = vpop.eup %2450 }
 0x740   : > { %v1302_v17 = vsel %vm742_vm3, %v2451_v16, 0.0 }
 0x741   : > { %1303 = vadd.xlane.f32.xlu0 %v1302_v17 }
 0x757   : > { %1459 = vrot.lane.b32.xlu0 %v2893_v25, %s2605_s14 }
 0x7ce   : > { %v1304_v18 = vpop.xlane.xlu0 %1303 }
 0x7cf   : > { %2452 = vrcp.f32 %v1304_v18  ;;  %v1830_v18 = vld [vmem:[%s2857_s17 + $0x30] sm:$0xff] }
 0x7d2   : > { %v1460_v21 = vpop.permute.xlu0 %1459 }
 0x7d9   : > { %v2453_v19 = vpop.eup %2452 }
 0x7da   : > { %v1306_v20 = vmul.f32 %v2453_v19, %v2451_v16  ;;  %v1829_v16 = vld [vmem:[%s2857_s17 + $0x28] sm:$0xff]  ;;  %v1831_v19 = vld [vmem:[%s2857_s17 + $0x38] sm:$0xff] }
 0x7db   : > { %v2343_v17 = vpack.c.bf16 %v1829_v16, %v1828_v15 }
 0x7dc   : > { %2272 = vmatmul.mubr.msk.f32.vlgmr.msra.gmra.mrb[6].mxu1 %vm742_vm3, %v1306_v20  ;;  %v2346_v20 = vpack.c.bf16 %v1831_v19, %v1830_v18 }
 0x7dd   : > { %2280 = vmatpush3.xpose.msk.msra.mxu1 %vm742_vm3, %v1460_v21  ;;  %2281 = vmatprep.mubr.msk.f32.mxu1 %vm2594_vm2, %v2595_v14  ;;  %v2167_v21 = vld [vmem:[%s610_s3] ss:$0 sm:$0xff] }
 0x7de   : > { %2289 = vmatprep.subr.mxu1 %v2595_v14 }
 0x7e0   : > { %2282 = vmatmul.mubr.msk.f32.vlgmr.msra.gmra.mrb[8].mxu1 %vm742_vm3, %v1458_v22 }
 0x7e1   : > { %2291 = vmatprep.mubr.msk.f32.mxu1 %vm2594_vm2, %v2595_v14  ;;  %2290 = vmatpush3.msra.mxu1 %v738_v36 }
 0x7e2   : > { %2336 = vmatprep.subr.bf16.mxu1 %v2593_v11 }
 0x8af   : > { %v1379_v24 = vpop.f32.mrb[6].mxu1 }
 0x8b0   : > { %v2273_v26 = vpop.f32.mrb[7].mxu1  ;;  %2277 = vmatmul.mubr.msk.f32.vlgmr.msra.gmra.mrb[10].mxu0 %vm742_vm3, %v1379_v24 }
 0x8b1   : > { %2286 = vmatprep.mubr.msk.f32.mxu0 %vm2594_vm2, %v2595_v14 }
 0x8b3   : > { %v1531_v27 = vpop.f32.mrb[8].mxu1 }
 0x8b4   : > { %v1535_v28 = vmul.f32 0.35355338, %v1531_v27  ;;  %v2283_v29 = vpop.f32.mrb[9].mxu1 }
 0x8b6   : > { %v1536_v30 = vsel %vm742_vm3, %v1535_v28, -inf }
 0x8b7   : > { %1537 = vmax.xlane.f32.xlu1 %v1536_v30 }
 0x944   : > { %v1538_v31 = vpop.xlane.xlu1 %1537 }
 0x945   : > { %v1539_v32 = vsub.f32 %v1535_v28, %v1538_v31  ;;  %v2170_v31 = vld [vmem:[%s618_s5] ss:$0 sm:$0xff] }
 0x947   : > { %v1540_v33 = vmul.f32 1.442695, %v1539_v32 }
 0x949   : > { %2454 = vpow2.f32 %v1540_v33 }
 0x953   : > { %v2455_v34 = vpop.eup %2454 }
 0x954   : > { %v1542_v35 = vsel %vm742_vm3, %v2455_v34, 0.0 }
 0x955   : > { %1543 = vadd.xlane.f32.xlu0 %v1542_v35 }
 0x96b   : > { %1547 = vrot.lane.b32.xlu0 %v2893_v25, %s2606_s29 }
 0x983   : > { %v1452_v37 = vpop.f32.mrb[10].mxu0 }
 0x984   : > { %v1456_v38 = vadd.f32 %v1452_v37, %v1214_v4  ;;  %v2278_v39 = vpop.f32.mrb[11].mxu0  ;;  %v2166_v4 = vld [vmem:[%s602_s21] ss:$0 sm:$0xff] }
 0x9e2   : > { %v1544_v40 = vpop.xlane.xlu0 %1543 }
 0x9e3   : > { %2456 = vrcp.f32 %v1544_v40 }
 0x9e6   : > { %v1548_v41 = vpop.permute.xlu0 %1547 }
 0x9e7   : > { %2285 = vmatpush3.msra.mxu0 %v1548_v41 }
 0x9e8   : > { %2330 = vmatprep.subr.bf16.mxu0 %v2593_v11 }
 0x9ed   : > { %v2457_v42 = vpop.eup %2456 }
 0x9ee   : > { %v1546_v43 = vmul.f32 %v2457_v42, %v2455_v34 }
 0x9f0   : > { %2287 = vmatmul.mubr.msk.f32.vlgmr.msra.gmra.mrb[12].mxu0 %vm742_vm3, %v1546_v43 }
 0x9f1   : > { %2302 = vmatprep.mubr.msk.f32.mxu0 %vm2594_vm2, %v2595_v14  ;;  %2332 = vmatpush3.bf16.msra.mxu0 %v2331_v58 }
 0x9f2   : > { %2333 = vmatprep.subr.bf16.mxu0 %v2593_v11 }
 0xac3   : > { %v1619_v25 = vpop.f32.mrb[12].mxu0 }
 0xac4   : > { %v2288_v44 = vpop.f32.mrb[13].mxu0  ;;  %2292 = vmatmul.mubr.msk.f32.vlgmr.msra.gmra.mrb[10].mxu1 %vm742_vm3, %v1619_v25 }
 0xac5   : > { %2321 = vmatprep.mubr.msk.f32.mxu1 %vm2594_vm2, %v2595_v14  ;;  %2338 = vmatpush3.bf16.msra.mxu1 %v2337_v9 }
 0xac6   : > { %2339 = vmatprep.subr.bf16.mxu1 %v2593_v11 }
 0xac9   : > { %2341 = vmatpush3.bf16.msra.mxu1 %v2340_v13 }
 0xaca   : > { %2342 = vmatprep.subr.bf16.mxu1 %v2593_v11 }
 0xacd   : > { %2344 = vmatpush3.bf16.msra.mxu1 %v2343_v17 }
 0xace   : > { %2345 = vmatprep.subr.bf16.mxu1 %v2593_v11 }
 0xad1   : > { %2347 = vmatpush3.bf16.msra.mxu1 %v2346_v20 }
 0xb97   : > { %v1692_v45 = vpop.f32.mrb[10].mxu1 }
 0xb98   : > { %v1696_v46 = vadd.f32 %v1692_v45, %v1456_v38  ;;  %v2293_v47 = vpop.f32.mrb[11].mxu1 }
 0xb9a   : > { %v1697_v49 = vadd.f32 %v1696_v46, %v2862_v1  ;;  %v1737_v1 = vld [vmem:[%s2843_s27 + $0x10] sm:$0xff] }
 0xb9b   : > { %v2334_v60 = vpack.c.bf16 %v1738_v59, %v1737_v1 }
 0xb9c   : > { %v1705_v50 = vadd.f32 %v2164_v48, %v1697_v49 }
 0xb9d   : > { %2335 = vmatpush3.bf16.msra.mxu0 %v2334_v60 }
 0xb9e   : > { %v1708_v51 = vsel %vm629_vm1, %v1705_v50, 0.0 }
 0xb9f   : > { %1709 = vadd.xlane.f32.xlu1 %v1708_v51 }
 0xc2c   : > { %v1710_v52 = vpop.xlane.xlu1 %1709 }
 0xc2d   : > { %v1711_v53 = vmul.f32 0.03125, %v1710_v52 }
 0xc2f   : > { %v1712_v14 = vsub.f32 %v1705_v50, %v1711_v53 }
 0xc31   : > { %v1713_v54 = vmul.f32 %v1712_v14, %v1712_v14 }
 0xc33   : > { %v1714_v55 = vsel %vm629_vm1, %v1713_v54, 0.0 }
 0xc34   : > { %1715 = vadd.xlane.f32.xlu1 %v1714_v55 }
 0xcc1   : > { %v1716_v61 = vpop.xlane.xlu1 %1715 }
 0xcc2   : > { %v1717_v62 = vmul.f32 0.03125, %v1716_v61 }
 0xcc4   : > { %v1718_v63 = vadd.f32 1e-05, %v1717_v62 }
 0xcc6   : > { %2458 = vrsqrt.f32 %v1718_v63 }
 0xcd0   : > { %v2459_v0 = vpop.eup %2458 }
 0xcd1   : > { %v1720_v3 = vmul.f32 %v2459_v0, %v1712_v14 }
 0xcd3   : > { %v1727_v5 = vmul.f32 %v2165_v2, %v1720_v3 }
 0xcd5   : > { %v1734_v6 = vadd.f32 %v2166_v4, %v1727_v5 }
 0xcd7   : > { %2303 = vmatmul.mubr.msk.f32.vlgmr.msra.gmra.mrb[14].mxu0 %vm629_vm1, %v1734_v6 }
 0xdaa   : > { %v1815_v22 = vpop.f32.mrb[14].mxu0 }
 0xdab   : > { %v1816_v23 = vadd.f32 %v2167_v21, %v1815_v22  ;;  %v2304_v24 = vpop.f32.mrb[15].mxu0 }
 0xdad   : > { %v1820_v26 = vmul.f32 0.70710677, %v1816_v23  ;;  %v1819_v28 = vmul.f32 0.5, %v1816_v23 }
 0xdaf   : > { %2460 = verf.f32 %v1820_v26 }
 0xdb9   : > { %v2461_v27 = vpop.eup %2460 }
 0xdba   : > { %v1822_v29 = vadd.f32 1.0, %v2461_v27 }
 0xdbc   : > { %v1823_v11 = vmul.f32 %v1822_v29, %v1819_v28 }
 0xdbe   : > { %2322 = vmatmul.mubr.msk.f32.vlgmr.msra.gmra.mrb[12].mxu1 %vm1832_vm4, %v1823_v11 }
 0xe90   : > { %1919 = sbr.rel (%p2171_p11) target bundleno = 3735 (0xe97), region = 80 }
 0xe91   : > { %v1902_v30 = vpop.f32.mrb[12].mxu1 }
 0xe92   : > { %v1906_v32 = vadd.f32 %v1902_v30, %v1705_v50  ;;  %v2323_v33 = vpop.f32.mrb[13].mxu1 }
 0xe94   : > { %v1914_v34 = vadd.f32 %v2170_v31, %v1906_v32 }
 0xe96   : > { %1915 = vst.msk [vmem:[#allocation2] sm:$0xff] %vm629_vm1, %v1914_v34  ;;  %1920 = vst.msk [vmem:[%s2859_s13] sm:$0xff] (!%p2171_p11), %vm629_vm1, %v1914_v34 }
 0xe97 PF: > { %s3134_s3 = sld [smem:[#allocation12_spill]]  ;;  %s3135_s28 = sld [smem:[#allocation21_spill]] }
 0xe98   : > { %s3136_s12 = sld [smem:[#allocation18_spill]]  ;;  %s3137_s5 = sld [smem:[#allocation26_spill]] }
 0xe99   : > { %s1935_s20 = sshll.u32 %s2859_s13, 4  ;;  %s2607_s24 = smov [#allocation6]   ;;  %s1936_s20 = int_to_ptr.vmem [resolvable:$true] %s1935_s20 }
 0xe9a   : > { %s2492_s19 = scalar_lea.vmem %s1936_s20, 128  ;;  %s2496_s26 = sshll.u32 %s2607_s24, 4  ;;  %s2497_s26 = int_to_ptr.vmem [resolvable:$false] %s2496_s26 }
 0xe9b   : > { %p2493_p0 = scmp.ne.s32.totalorder %s1936_s20, %s2492_s19  ;;  %s2498_s0 = scalar_lea.vmem %s2497_s26, 256 }
 0xe9c   : > { %p2499_p6 = scmp.lt.s32.totalorder %s1936_s20, %s2497_s26  ;;  %p2500_p3 = scmp.lt.s32.totalorder %s2498_s0, %s2492_s19 }
 0xe9d   : > { %s2173_s4 = sshll.u32 %s3134_s3, 7  ;;  %s1922_s15 = scalar_lea.sflag [#allocation5], %s3135_s28 }
 0xe9e   : > { %s3024_s29 = scalar_lea.hbm %s3137_s5, %s2173_s4  ;;  %p3138_p7 = scmp.ne.s32.totalorder %s3136_s12, 0 }
 0xe9f   : > { %p2501_p8 = por %p2500_p3, %p2499_p6 }
 0xea0   : > { %p2494_p13 = pnand %p2493_p0, %p3138_p7 }
 0xea2   : > { %p2495_p4 = pneg %p2494_p13 }
 0xea4   : > { %p2502_p12 = pnand %p2501_p8, %p2495_p4 }
 0xea6   : > { %2505 = shalt.err (!%p2502_p12)
}
 0xea7   : > { %s2506_s13 = scalar_lea.hbm %s3024_s29, 128  ;;  %s2510_s18 = scalar_lea.hbm %s3137_s5, 256 }
 0xea8   : > { %p2507_p1 = scmp.ne.s32.totalorder %s3024_s29, %s2506_s13  ;;  %p2511_p10 = scmp.lt.u32.totalorder %s3024_s29, %s3137_s5 }
 0xea9   : > { %p2512_p9 = scmp.lt.u32.totalorder %s2510_s18, %s2506_s13  ;;  %p2514_p0 = scmp.lt.u32.totalorder %s2506_s13, %s3024_s29 }
 0xeaa   : > { %p2508_p2 = pnand %p2507_p1, %p3138_p7 }
 0xeab   : > { %p2513_p11 = por %p2512_p9, %p2511_p10 }
 0xeac   : > { %p2509_p5 = pneg %p2508_p2 }
 0xead   : > { %p2515_p13 = por %p2514_p0, %p2513_p11 }
 0xeaf   : > { %p2516_p4 = pnand %p2515_p13, %p2509_p5 }
 0xeb1   : > { %2519 = shalt.err (!%p2516_p4)
}
 0xeb2   : > { %2350 = dma.vmem_to_hbm [thread:$0]  (%p3138_p7), %s1936_s20, 128, %s3024_s29, %s1922_s15  }
 0xeb3 PF: > { %s3139_s21 = sld [smem:[#allocation15_spill]]  ;;  %s3140_s17 = sld [smem:[#allocation9_spill]] }
 0xeb4   : > { %s3141_s23 = sld [smem:[#allocation19_spill]] }
 0xeb9   : > { %p2361_p6 = scmp.ge.s32.totalorder %s3139_s21, 2  ;;  %s1947_s3 = sand.u32 1, %s3140_s17  }
 0xeba   : > { %p3142_p3 = scmp.ne.s32.totalorder %s3141_s23, 0  ;;  %s1948_s28 = scalar_lea.sflag [#allocation5], %s1947_s3 }
 0xebc   : > { %p2357_p8 = pnand %p2361_p6, %p3142_p3 }
 0xebe   : > { %2557 = dma.done.wait (!%p2357_p8), %s1948_s28, 128  }
 0xebf   : > { %2559 = vsyncadd (!%p2357_p8), %s1948_s28, 4294967168  ;;  %s28_s28 = sadd.s32 1, %s3139_s21   ;;  %s3143_s21 = sld [smem:[#allocation10_spill]] }
 0xec0   : > { %p25_p12 = scmp.ge.s32.totalorder %s28_s28, 6   ;;  %s3144_s22 = sld [smem:[#allocation11_spill]] }
 0xec1   : > { %s3145_s23 = sld [smem:[#allocation20_spill]]  ;;  %s3146_s24 = sld [smem:[#allocation13_spill]] }
 0xec2   : > { %s3147_s25 = sld [smem:[#allocation14_spill]]  ;;  %s3148_s26 = sld [smem:[#allocation16_spill]] }
 0xec3   : > { %s3149_s27 = sld [smem:[#allocation17_spill]]  ;;  %27 = sbr.rel (!%p25_p12) target bundleno = 13 (0xd), region = 154 }
 0xeca   :  { %1953 = vsyncpa [#allocation4], 1 }
 0xecb   :  { %1955 = vsyncpa [#allocation4 + $0x1], 1 }
 0xecc   :  { %1956 = vsyncpa [#allocation5], 1 }
 0xecd   :  { %1958 = vsyncpa [#allocation5 + $0x1], 1 }

</bundles_post_ra>
